<compile_context>
chip_gen: v5e
topology: v5e:2x2
jax: 0.10.0
libtpu: 0.0.40
codegen_flags: <defaults>
</compile_context>

<pallas_src>
import functools

import jax
import jax.numpy as jnp
from jax import lax
from jax.experimental import pallas as pl
from jax.experimental.pallas import tpu as pltpu

HIDDEN = 64      # trunk width (matches nn.Linear(obs, 64) / (64, 64))
HEAD_PAD = 128   # lane-dense fused head width: [policy | value | zero pad]


def _round_up(x, m):
    return (x + m - 1) // m * m


def actor_critic_kernel(x_ref, w1_ref, b1_ref, w2_ref, b2_ref,
                        wh_ref, bh_ref, probs_ref, value_ref, *, act_dim):
    # ---- trunk: Linear -> ReLU -> Linear -> ReLU (f32 accumulate) ----
    x = x_ref[...]
    h = jnp.dot(x, w1_ref[...], preferred_element_type=jnp.float32) + b1_ref[...]
    h = jnp.maximum(h, 0.0)
    h = jnp.dot(h, w2_ref[...], preferred_element_type=jnp.float32) + b2_ref[...]
    h = jnp.maximum(h, 0.0)

    # ---- fused heads: one (HIDDEN, HEAD_PAD) matmul ----
    # columns [0, act_dim)   -> policy logits
    # column  act_dim        -> value
    # columns (act_dim, 128) -> zero padding
    logits = jnp.dot(h, wh_ref[...], preferred_element_type=jnp.float32) + bh_ref[...]

    lane = lax.broadcasted_iota(jnp.int32, logits.shape, 1)
    is_policy = lane < act_dim

    # softmax over the policy lanes only (padded lanes masked to -1e30 -> exp 0)
    masked = jnp.where(is_policy, logits, -1e30)
    m = jnp.max(masked, axis=-1, keepdims=True)
    e = jnp.exp(masked - m)
    denom = jnp.sum(e, axis=-1, keepdims=True)
    probs = e / denom  # exact divide: rows sum to 1 for downstream Categorical

    # narrow outputs: only the bytes we actually need go back to HBM
    probs_ref[...] = probs[:, :act_dim]
    value_ref[...] = logits[:, act_dim:act_dim + 1]


def fuse_head_params(params):
    """One-time prep: fuse policy + value head weights into a lane-dense
    [HIDDEN, 128] block (hoisted out of the per-call forward)."""
    act_dim = params["wp"].shape[1]
    assert act_dim + 1 <= HEAD_PAD
    wh = jnp.zeros((HIDDEN, HEAD_PAD), jnp.float32)
    wh = wh.at[:, :act_dim].set(params["wp"])
    wh = wh.at[:, act_dim:act_dim + 1].set(params["wv"])
    bh = jnp.zeros((1, HEAD_PAD), jnp.float32)
    bh = bh.at[:, :act_dim].set(params["bp"])
    bh = bh.at[:, act_dim:act_dim + 1].set(params["bv"])
    return dict(w1=params["w1"], b1=params["b1"],
                w2=params["w2"], b2=params["b2"],
                wh=wh, bh=bh), act_dim


@functools.partial(jax.jit, static_argnames=("act_dim", "tile_b"))
def actor_critic_forward(x, fused, *, act_dim, tile_b=2048):
    """Returns (policy_probs [B, act_dim], value [B, 1])."""
    B, obs_dim = x.shape

    # Batch tile: multiple of 8 (f32 sublane tile). Prefer >= 2 grid steps so
    # dimension_semantics=("parallel",) can shard across v7x's 2 TensorCores,
    # while still growing the tile toward tile_b (default 2048) so per-grid-
    # step overhead amortizes. VMEM per tile stays a few MiB even at TB=2048.
    tile_b = max(8, _round_up(tile_b, 8))
    B8 = _round_up(B, 8)
    TB = min(tile_b, _round_up(pl.cdiv(B8, 2), 8))
    B_pad = _round_up(B8, TB)
    if B_pad != B:
        x = jnp.pad(x, ((0, B_pad - B), (0, 0)))

    grid = (B_pad // TB,)

    weight_elems = (obs_dim * HIDDEN + HIDDEN + HIDDEN * HIDDEN + HIDDEN
                    + HIDDEN * HEAD_PAD + HEAD_PAD)
    cost = pl.CostEstimate(
        flops=2 * B_pad * (obs_dim * HIDDEN + HIDDEN * HIDDEN + HIDDEN * HEAD_PAD),
        transcendentals=B_pad * HEAD_PAD,
        bytes_accessed=4 * (B_pad * (obs_dim + act_dim + 1) + weight_elems),
    )

    probs, value = pl.pallas_call(
        functools.partial(actor_critic_kernel, act_dim=act_dim),
        out_shape=(
            jax.ShapeDtypeStruct((B_pad, act_dim), jnp.float32),
            jax.ShapeDtypeStruct((B_pad, 1), jnp.float32),
        ),
        grid=grid,
        in_specs=[
            pl.BlockSpec((TB, obs_dim), lambda i: (i, 0)),        # x: batch-tiled
            pl.BlockSpec((obs_dim, HIDDEN), lambda i: (0, 0)),    # w1 (resident)
            pl.BlockSpec((1, HIDDEN), lambda i: (0, 0)),          # b1
            pl.BlockSpec((HIDDEN, HIDDEN), lambda i: (0, 0)),     # w2
            pl.BlockSpec((1, HIDDEN), lambda i: (0, 0)),          # b2
            pl.BlockSpec((HIDDEN, HEAD_PAD), lambda i: (0, 0)),   # fused head W
            pl.BlockSpec((1, HEAD_PAD), lambda i: (0, 0)),        # fused head b
        ],
        out_specs=(
            pl.BlockSpec((TB, act_dim), lambda i: (i, 0)),        # policy probs
            pl.BlockSpec((TB, 1), lambda i: (i, 0)),              # value
        ),
        compiler_params=pltpu.CompilerParams(
            dimension_semantics=("parallel",)),
        cost_estimate=cost,
    )(
        x,
        fused["w1"], fused["b1"],
        fused["w2"], fused["b2"],
        fused["wh"], fused["bh"],
    )

    return probs[:B], value[:B]


def init_params(key, obs_dim, act_dim, hidden=HIDDEN):
    """Deterministic init mimicking nn.Linear's U(-1/sqrt(fan_in), 1/sqrt(fan_in))."""
    def linear(key, fan_in, fan_out):
        kw, kb = jax.random.split(key)
        bound = 1.0 / jnp.sqrt(float(fan_in))
        # stored as [in, out]  (transpose of PyTorch's [out, in])
        w = jax.random.uniform(kw, (fan_in, fan_out), jnp.float32, -bound, bound)
        b = jax.random.uniform(kb, (1, fan_out), jnp.float32, -bound, bound)
        return w, b

    k1, k2, k3, k4 = jax.random.split(key, 4)
    w1, b1 = linear(k1, obs_dim, hidden)
    w2, b2 = linear(k2, hidden, hidden)
    wp, bp = linear(k3, hidden, act_dim)
    wv, bv = linear(k4, hidden, 1)
    return dict(w1=w1, b1=b1, w2=w2, b2=b2, wp=wp, bp=bp, wv=wv, bv=bv)


def reference_forward(x, p):
    """Pure-JAX reference reproducing the PyTorch forward semantics."""
    h = jnp.maximum(x @ p["w1"] + p["b1"], 0.0)
    h = jnp.maximum(h @ p["w2"] + p["b2"], 0.0)
    logits = h @ p["wp"] + p["bp"]
    probs = jax.nn.softmax(logits, axis=-1)
    value = h @ p["wv"] + p["bv"]
    return probs, value


if __name__ == "__main__":
    obs_dim, act_dim, batch = 8, 4, 2
    key = jax.random.PRNGKey(0)
    kx, kp = jax.random.split(key)
    x = jax.random.normal(kx, (batch, obs_dim), jnp.float32)
    params = init_params(kp, obs_dim, act_dim)

    # One-time head fusion (hoisted out of the jitted forward).
    fused, act_dim_f = fuse_head_params(params)

    policy, value = actor_critic_forward(x, fused, act_dim=act_dim_f)
    jax.block_until_ready((policy, value))

    ref_policy, ref_value = reference_forward(x, params)
    assert policy.shape == (batch, act_dim)
    assert value.shape == (batch, 1)
    assert jnp.allclose(policy, ref_policy, atol=1e-5, rtol=1e-5)
    assert jnp.allclose(value, ref_value, atol=1e-5, rtol=1e-5)
    assert jnp.allclose(jnp.sum(policy, axis=-1), 1.0, atol=1e-5)

    print("KERNEL_OK")
</pallas_src>

<mosaic_0001>
module attributes {stable_mosaic.version = 11 : i64} {
  func.func @actor_critic_kernel(%arg0: i32, %arg1: memref<8x8xf32, #tpu.memory_space<vmem>>, %arg2: memref<8x64xf32, #tpu.memory_space<vmem>>, %arg3: memref<1x64xf32, #tpu.memory_space<vmem>>, %arg4: memref<64x64xf32, #tpu.memory_space<vmem>>, %arg5: memref<1x64xf32, #tpu.memory_space<vmem>>, %arg6: memref<64x128xf32, #tpu.memory_space<vmem>>, %arg7: memref<1x128xf32, #tpu.memory_space<vmem>>, %arg8: memref<8x4xf32, #tpu.memory_space<vmem>>, %arg9: memref<8x1xf32, #tpu.memory_space<vmem>>) attributes {dimension_semantics = [#tpu.dimension_semantics<parallel>], iteration_bounds = array<i64: 1>, scalar_prefetch = 0 : i64, scratch_operands = 0 : i64, tpu.core_type = #tpu.core_type<tc>, window_params = [{transform_indices = @transform_0, window_bounds = array<i64: 8, 8>}, {pipeline_mode = #tpu.pipeline_mode<synchronous>, transform_indices = @transform_1, window_bounds = array<i64: 8, 64>}, {pipeline_mode = #tpu.pipeline_mode<synchronous>, transform_indices = @transform_2, window_bounds = array<i64: 1, 64>}, {pipeline_mode = #tpu.pipeline_mode<synchronous>, transform_indices = @transform_3, window_bounds = array<i64: 64, 64>}, {pipeline_mode = #tpu.pipeline_mode<synchronous>, transform_indices = @transform_4, window_bounds = array<i64: 1, 64>}, {pipeline_mode = #tpu.pipeline_mode<synchronous>, transform_indices = @transform_5, window_bounds = array<i64: 64, 128>}, {pipeline_mode = #tpu.pipeline_mode<synchronous>, transform_indices = @transform_6, window_bounds = array<i64: 1, 128>}, {transform_indices = @transform_7, window_bounds = array<i64: 8, 4>}, {transform_indices = @transform_8, window_bounds = array<i64: 8, 1>}]} {
    %c0 = arith.constant 0 : index
    %c0_0 = arith.constant 0 : index
    %0 = vector.load %arg1[%c0, %c0_0] : memref<8x8xf32, #tpu.memory_space<vmem>>, vector<8x8xf32>
    %c0_1 = arith.constant 0 : index
    %c0_2 = arith.constant 0 : index
    %1 = vector.load %arg2[%c0_1, %c0_2] : memref<8x64xf32, #tpu.memory_space<vmem>>, vector<8x64xf32>
    %cst = arith.constant dense<0.000000e+00> : vector<8x64xf32>
    %2 = tpu.matmul %0, %1, %cst {dimension_numbers = #tpu.dot_dimension_numbers<[1], [0], [0], [1], [0, 0, 1, 1], [], []>} : vector<8x8xf32>, vector<8x64xf32>, vector<8x64xf32> -> vector<8x64xf32>
    %c0_3 = arith.constant 0 : index
    %c0_4 = arith.constant 0 : index
    %3 = vector.load %arg3[%c0_3, %c0_4] : memref<1x64xf32, #tpu.memory_space<vmem>>, vector<1x64xf32>
    %4 = vector.broadcast %3 : vector<1x64xf32> to vector<8x64xf32>
    %5 = arith.addf %2, %4 : vector<8x64xf32>
    %cst_5 = arith.constant 0.000000e+00 : f32
    %6 = vector.broadcast %cst_5 : f32 to vector<8x64xf32>
    %7 = arith.maximumf %5, %6 : vector<8x64xf32>
    %c0_6 = arith.constant 0 : index
    %c0_7 = arith.constant 0 : index
    %8 = vector.load %arg4[%c0_6, %c0_7] : memref<64x64xf32, #tpu.memory_space<vmem>>, vector<64x64xf32>
    %cst_8 = arith.constant dense<0.000000e+00> : vector<8x64xf32>
    %9 = tpu.matmul %7, %8, %cst_8 {dimension_numbers = #tpu.dot_dimension_numbers<[1], [0], [0], [1], [0, 0, 1, 1], [], []>} : vector<8x64xf32>, vector<64x64xf32>, vector<8x64xf32> -> vector<8x64xf32>
    %c0_9 = arith.constant 0 : index
    %c0_10 = arith.constant 0 : index
    %10 = vector.load %arg5[%c0_9, %c0_10] : memref<1x64xf32, #tpu.memory_space<vmem>>, vector<1x64xf32>
    %11 = vector.broadcast %10 : vector<1x64xf32> to vector<8x64xf32>
    %12 = arith.addf %9, %11 : vector<8x64xf32>
    %cst_11 = arith.constant 0.000000e+00 : f32
    %13 = vector.broadcast %cst_11 : f32 to vector<8x64xf32>
    %14 = arith.maximumf %12, %13 : vector<8x64xf32>
    %c0_12 = arith.constant 0 : index
    %c0_13 = arith.constant 0 : index
    %15 = vector.load %arg6[%c0_12, %c0_13] : memref<64x128xf32, #tpu.memory_space<vmem>>, vector<64x128xf32>
    %cst_14 = arith.constant dense<0.000000e+00> : vector<8x128xf32>
    %16 = tpu.matmul %14, %15, %cst_14 {dimension_numbers = #tpu.dot_dimension_numbers<[1], [0], [0], [1], [0, 0, 1, 1], [], []>} : vector<8x64xf32>, vector<64x128xf32>, vector<8x128xf32> -> vector<8x128xf32>
    %c0_15 = arith.constant 0 : index
    %c0_16 = arith.constant 0 : index
    %17 = vector.load %arg7[%c0_15, %c0_16] : memref<1x128xf32, #tpu.memory_space<vmem>>, vector<1x128xf32>
    %18 = vector.broadcast %17 : vector<1x128xf32> to vector<8x128xf32>
    %19 = arith.addf %16, %18 : vector<8x128xf32>
    %20 = tpu.iota {dimensions = array<i32: 1>} : vector<8x128xi32>
    %c4_i32 = arith.constant 4 : i32
    %21 = vector.broadcast %c4_i32 : i32 to vector<8x128xi32>
    %22 = arith.cmpi slt, %20, %21 : vector<8x128xi32>
    %cst_17 = arith.constant -1.000000e+30 : f32
    %23 = vector.broadcast %cst_17 : f32 to vector<8x128xf32>
    %24 = arith.select %22, %19, %23 : vector<8x128xi1>, vector<8x128xf32>
    %cst_18 = arith.constant dense<0xFF800000> : vector<8xf32>
    %25 = vector.multi_reduction <maximumf>, %24, %cst_18 [1] : vector<8x128xf32> to vector<8xf32>
    %26 = vector.shape_cast %25 : vector<8xf32> to vector<8x1xf32>
    %27 = vector.broadcast %26 : vector<8x1xf32> to vector<8x128xf32>
    %28 = arith.subf %24, %27 : vector<8x128xf32>
    %29 = math.exp %28 : vector<8x128xf32>
    %cst_19 = arith.constant dense<0.000000e+00> : vector<8xf32>
    %30 = vector.multi_reduction <add>, %29, %cst_19 [1] : vector<8x128xf32> to vector<8xf32>
    %31 = vector.shape_cast %30 : vector<8xf32> to vector<8x1xf32>
    %32 = vector.broadcast %31 : vector<8x1xf32> to vector<8x128xf32>
    %33 = arith.divf %29, %32 : vector<8x128xf32>
    %34 = vector.extract_strided_slice %33 {offsets = [0, 0], sizes = [8, 4], strides = [1, 1]} : vector<8x128xf32> to vector<8x4xf32>
    %c0_20 = arith.constant 0 : index
    %c0_21 = arith.constant 0 : index
    %35 = vector.load %arg8[%c0_20, %c0_21] : memref<8x4xf32, #tpu.memory_space<vmem>>, vector<8x4xf32>
    tpu.vector_store %arg8[%c0_20, %c0_21], %34 {strides = array<i32>} : memref<8x4xf32, #tpu.memory_space<vmem>>, vector<8x4xf32>,
    %36 = vector.extract_strided_slice %19 {offsets = [0, 4], sizes = [8, 1], strides = [1, 1]} : vector<8x128xf32> to vector<8x1xf32>
    %c0_22 = arith.constant 0 : index
    %c0_23 = arith.constant 0 : index
    %37 = vector.load %arg9[%c0_22, %c0_23] : memref<8x1xf32, #tpu.memory_space<vmem>>, vector<8x1xf32>
    tpu.vector_store %arg9[%c0_22, %c0_23], %36 {strides = array<i32>} : memref<8x1xf32, #tpu.memory_space<vmem>>, vector<8x1xf32>,
    return
  }
  func.func @transform_0(%arg0: i32) -> (i32, i32) {
    %c0_i32 = arith.constant 0 : i32
    %c0_i32_0 = arith.constant 0 : i32
    return %arg0, %c0_i32 : i32, i32
  }
  func.func @transform_1(%arg0: i32) -> (i32, i32) {
    %c0_i32 = arith.constant 0 : i32
    %c0_i32_0 = arith.constant 0 : i32
    %c0_i32_1 = arith.constant 0 : i32
    return %c0_i32, %c0_i32_0 : i32, i32
  }
  func.func @transform_2(%arg0: i32) -> (i32, i32) {
    %c0_i32 = arith.constant 0 : i32
    %c0_i32_0 = arith.constant 0 : i32
    %c0_i32_1 = arith.constant 0 : i32
    return %c0_i32, %c0_i32_0 : i32, i32
  }
  func.func @transform_3(%arg0: i32) -> (i32, i32) {
    %c0_i32 = arith.constant 0 : i32
    %c0_i32_0 = arith.constant 0 : i32
    %c0_i32_1 = arith.constant 0 : i32
    return %c0_i32, %c0_i32_0 : i32, i32
  }
  func.func @transform_4(%arg0: i32) -> (i32, i32) {
    %c0_i32 = arith.constant 0 : i32
    %c0_i32_0 = arith.constant 0 : i32
    %c0_i32_1 = arith.constant 0 : i32
    return %c0_i32, %c0_i32_0 : i32, i32
  }
  func.func @transform_5(%arg0: i32) -> (i32, i32) {
    %c0_i32 = arith.constant 0 : i32
    %c0_i32_0 = arith.constant 0 : i32
    %c0_i32_1 = arith.constant 0 : i32
    return %c0_i32, %c0_i32_0 : i32, i32
  }
  func.func @transform_6(%arg0: i32) -> (i32, i32) {
    %c0_i32 = arith.constant 0 : i32
    %c0_i32_0 = arith.constant 0 : i32
    %c0_i32_1 = arith.constant 0 : i32
    return %c0_i32, %c0_i32_0 : i32, i32
  }
  func.func @transform_7(%arg0: i32) -> (i32, i32) {
    %c0_i32 = arith.constant 0 : i32
    %c0_i32_0 = arith.constant 0 : i32
    return %arg0, %c0_i32 : i32, i32
  }
  func.func @transform_8(%arg0: i32) -> (i32, i32) {
    %c0_i32 = arith.constant 0 : i32
    %c0_i32_0 = arith.constant 0 : i32
    return %arg0, %c0_i32 : i32, i32
  }
}

</mosaic_0001>

<bundles_post_ra>
// kernel: actor_critic_forward.1
= control target key start
LH: loop header
LB: loop body
LE: loop exit
PB: predicated region body
PF: predicated region fallthrough
CT: control target
= control target key end

     0   :  { %14 = vsyncpa [#allocation3], 0  ;;  %s351_s0 = inlined_call_operand.vmem [shape: f32[8,8], index: 0, kind: input, shape index: {}]   ;;  %s352_s1 = inlined_call_operand.vmem [shape: f32[8,64], index: 1, kind: input, shape index: {}]   ;;  %s353_s2 = inlined_call_operand.vmem [shape: f32[1,64], index: 2, kind: input, shape index: {}]   ;;  %s354_s3 = inlined_call_operand.hbm [shape: f32[64,64], index: 3, kind: input, shape index: {}]   ;;  %s355_s4 = inlined_call_operand.vmem [shape: f32[1,64], index: 4, kind: input, shape index: {}]   ;;  %s356_s5 = inlined_call_operand.hbm [shape: f32[64,128], index: 5, kind: input, shape index: {}]   ;;  %s357_s6 = inlined_call_operand.vmem [shape: f32[1,128], index: 6, kind: input, shape index: {}]   ;;  %s358_s7 = inlined_call_operand.vmem [shape: f32[8,4], index: 7, kind: output, shape index: {0}]   ;;  %s359_s8 = inlined_call_operand.vmem [shape: f32[8,1], index: 8, kind: output, shape index: {1}]  }
   0x1   :  { %s26_s29 = sshll.u32 %s354_s3, 4  ;;  %s27_s29 = int_to_ptr.hbm [resolvable:$true] %s26_s29 }
   0x2   :  { %15 = vsyncpa [#allocation5], 0  ;;  %s274_s30 = smov [#allocation2]   ;;  %s41_s12 = sshll.u32 %s356_s5, 4  ;;  %s42_s12 = int_to_ptr.hbm [resolvable:$true] %s41_s12 }
   0x3   :  { %s28_s9 = sshll.u32 %s274_s30, 4  ;;  %s275_s13 = smov 128   ;;  %s29_s9 = int_to_ptr.vmem [resolvable:$true] %s28_s9 }
   0x4   :  { %s276_s14 = smov 8   ;;  %s277_s15 = smov [#allocation4]  }
   0x5   :  { %34 = dma.hbm_to_vmem [thread:$0]  %s27_s29, 1024, %s29_s9, [#allocation3], %s275_s13, %s275_s13, %s276_s14  }
   0x6   :  { %s43_s16 = sshll.u32 %s277_s15, 4  ;;  %s44_s16 = int_to_ptr.vmem [resolvable:$true] %s43_s16 }
   0x7   :  { %49 = dma.hbm_to_vmem [thread:$0]  %s42_s12, 1024, %s44_s16, [#allocation5], %s275_s13, %s275_s13, %s276_s14  }
   0x8   :  { %270 = dma.done.wait [#allocation3], 1024  }
   0x9   :  { %271 = vsyncadd [#allocation3], 4294966272 }
   0xa   :  { %272 = dma.done.wait [#allocation5], 1024  }
   0xb   :  { %273 = vsyncadd [#allocation5], 4294966272  ;;  %vm66_vm0 = vcmask 64512   ;;  %v61_v0 = vld [vmem:[%s352_s1] sm:$0xff]  ;;  %v98_v2 = vld [vmem:[#allocation2 + $0x38] sm:$0xff]  ;;  %vm103_vm1 = vcmask 523264   ;;  %v163_v26 = vlaneseq }
   0xc   :  { %v60_v1 = vld [vmem:[%s351_s0] sm:$0xff]  ;;  %85 = vmatpush.msra.mxu0 %v61_v0  ;;  %115 = vmatpush.msra.mxu1 %v98_v2  ;;  %v97_v3 = vld [vmem:[#allocation2 + $0x30] sm:$0xff]  ;;  %v96_v4 = vld [vmem:[#allocation2 + $0x28] sm:$0xff]  ;;  %s278_s22 = smov 124   ;;  %vm195_vm3 = vcmask 7168   ;;  %vm189_vm8 = vcmask 31744  }
   0xd   :  { %207 = vmatmul.msk.f32.vlgmr.msra.gmra.mxu0 %vm66_vm0, %v60_v1  ;;  %v95_v5 = vld [vmem:[#allocation2 + $0x20] sm:$0xff]  ;;  %v94_v6 = vld [vmem:[#allocation2 + $0x18] sm:$0xff]  ;;  %v93_v7 = vld [vmem:[#allocation2 + $0x10] sm:$0xff]  ;;  %v164_v27 = vand.u32 127, %v163_v26 }
   0xe   :  { %116 = vmatpush.msra.mxu1 %v97_v3  ;;  %v92_v8 = vld [vmem:[#allocation2 + $0x8] sm:$0xff]  ;;  %v91_v9 = vld [vmem:[#allocation2] sm:$0xff]  ;;  %v135_v10 = vld [vmem:[#allocation4 + $0x38] sm:$0xff] }
   0xf   :  { %v134_v11 = vld [vmem:[#allocation4 + $0x30] sm:$0xff]  ;;  %151 = vmatpush.msra.mxu2 %v135_v10  ;;  %v133_v12 = vld [vmem:[#allocation4 + $0x28] sm:$0xff]  ;;  %v132_v13 = vld [vmem:[#allocation4 + $0x20] sm:$0xff]  ;;  %vm165_vm2 = vcmp.lt.s32.totalorder %v164_v27, 4 }
  0x10   :  { %117 = vmatpush.msra.mxu1 %v96_v4  ;;  %v131_v14 = vld [vmem:[#allocation4 + $0x18] sm:$0xff]  ;;  %v215_v15 = vld [vmem:[%s353_s2] ss:$0 sm:$0xff]  ;;  %v130_v19 = vld [vmem:[#allocation4 + $0x10] sm:$0xff] }
  0x11   :  { %152 = vmatpush.msra.mxu2 %v134_v11  ;;  %v129_v20 = vld [vmem:[#allocation4 + $0x8] sm:$0xff]  ;;  %v128_v21 = vld [vmem:[#allocation4] sm:$0xff] }
  0x12   :  { %118 = vmatpush.msra.mxu1 %v95_v5  ;;  %v216_v22 = vld [vmem:[%s355_s4] ss:$0 sm:$0xff] }
  0x13   :  { %153 = vmatpush.msra.mxu2 %v133_v12  ;;  %v217_v28 = vld [vmem:[%s357_s6] ss:$0 sm:$0xff] }
  0x14   :  { %119 = vmatpush.msra.mxu1 %v94_v6 }
  0x15   :  { %154 = vmatpush.msra.mxu2 %v132_v13 }
  0x16   :  { %120 = vmatpush.msra.mxu1 %v93_v7 }
  0x17   :  { %155 = vmatpush.msra.mxu2 %v131_v14 }
  0x18   :  { %121 = vmatpush.msra.mxu1 %v92_v8 }
  0x19   :  { %156 = vmatpush.msra.mxu2 %v130_v19 }
  0x1a   :  { %122 = vmatpush.msra.mxu1 %v91_v9 }
  0x1b   :  { %157 = vmatpush.msra.mxu2 %v129_v20 }
  0x1d   :  { %158 = vmatpush.msra.mxu2 %v128_v21 }
  0x8a   :  { %v87_v16 = vpop.f32.mrf.mxu0 }
  0x8b   :  { %v88_v17 = vadd.f32 %v215_v15, %v87_v16 }
  0x8d   :  { %v90_v18 = vmax.f32 %v88_v17, 0.0 }
  0x8f   :  { %208 = vmatmul.msk.f32.vlgmr.msra.gmra.mxu1 %vm103_vm1, %v90_v18 }
 0x10c   :  { %v124_v23 = vpop.f32.mrf.mxu1 }
 0x10d   :  { %v125_v24 = vadd.f32 %v216_v22, %v124_v23 }
 0x10f   :  { %v127_v25 = vmax.f32 %v125_v24, 0.0 }
 0x111   :  { %209 = vmatmul.msk.f32.vlgmr.msra.gmra.mxu2 %vm103_vm1, %v127_v25 }
 0x194   :  { %v160_v29 = vpop.f32.mrf.mxu2 }
 0x195   :  { %v161_v30 = vadd.f32 %v217_v28, %v160_v29 }
 0x197   :  { %192 = vrot.lane.b32.xlu1 %v161_v30, %s278_s22  ;;  %v166_v31 = vsel %vm165_vm2, %v161_v30, -1e+30 }
 0x198   :  { %167 = vmax.xlane.f32.xlu0 %v166_v31 }
 0x209   :  { %v193_v32 = vpop.permute.xlu1 %192 }
 0x20a   :  { %196 = vst.msk [vmem:[%s359_s8] sm:$0xff] %vm195_vm3, %v193_v32 }
 0x20b   :  { %v168_v33 = vpop.xlane.xlu0 %167 }
 0x20c   :  { %v169_v34 = vsub.f32 %v166_v31, %v168_v33 }
 0x20e   :  { %v170_v35 = vmul.f32 1.442695, %v169_v34 }
 0x210   :  { %218 = vpow2.f32 %v170_v35 }
 0x216   :  { %v219_v36 = vpop.eup %218 }
 0x217   :  { %172 = vadd.xlane.f32.xlu0 %v219_v36 }
 0x28a   :  { %v173_v37 = vpop.xlane.xlu0 %172 }
 0x28b   :  { %220 = vrcp.f32 %v173_v37  ;;  %v185_v41 = vand.u32 2147483648, %v173_v37  ;;  %v183_v43 = vand.u32 2147483647, %v173_v37  ;;  %vm179_vm5 = vweird.f32 %v173_v37 }
 0x28d   :  { %v186_v45 = vor.u32 1.1754944e-38, %v185_v41  ;;  %vm184_vm7 = vcmp.eq.f32.partialorder %v183_v43, 8.507059e+37 }
 0x291   :  { %v221_v38 = vpop.eup %220 }
 0x292   :  { %v175_v39 = vmul.f32 %v221_v38, %v173_v37  ;;  %vm180_vm4 = vweird.f32 %v221_v38 }
 0x293   :  { %vm181_vm6 = vmor %vm179_vm5, %vm180_vm4 }
 0x294   :  { %v176_v40 = vsub.f32 1.0, %v175_v39 }
 0x296   :  { %v177_v42 = vmul.f32 %v221_v38, %v176_v40 }
 0x298   :  { %v178_v44 = vadd.f32 %v221_v38, %v177_v42 }
 0x29a   :  { %v182_v46 = vsel %vm181_vm6, %v221_v38, %v178_v44 }
 0x29b   :  { %v187_v47 = vsel %vm184_vm7, %v186_v45, %v182_v46 }
 0x29c   :  { %v188_v48 = vmul.f32 %v219_v36, %v187_v47 }
 0x29e   :  { %190 = vst.msk [vmem:[%s358_s7] sm:$0xff] %vm189_vm8, %v188_v48 }
 0x29f   :  { %205 = vsyncpa [#allocation3], 1 }
 0x2a0   :  { %206 = vsyncpa [#allocation5], 1 }

</bundles_post_ra>
